<compile_context>
chip_gen: v6e
topology: v6e:2x2x1
jax: 0.10.0
libtpu: 0.0.40
codegen_flags: <defaults>
</compile_context>

<pallas_src>
import jax
import jax.numpy as jnp
from jax.experimental import pallas as pl
from jax.experimental.pallas import tpu as pltpu

_INIT_ENABLED = False  # mirrors compression.nn._INIT_ENABLED


# ----------------------------- Pallas kernels ------------------------------

def _affine_kernel(x_ref, scale_ref, bias_ref, y_ref):
    # x/y: (tr, tm) tile, scale/bias: (tr, 1) per-row params (resident).
    # The add+mul is VPU filler fully hidden under the HBM stream.
    y_ref[...] = (x_ref[...] + bias_ref[...]) * scale_ref[...]


def _reduce_kernel(x_ref, sum_ref, ssq_ref):
    # Grid = (row_tiles, col_tiles); column axis is the reduction ("arbitrary",
    # last).  Output blocks depend only on the row index -> stay resident and
    # accumulate across column tiles in f32.
    j = pl.program_id(1)

    @pl.when(j == 0)
    def _():
        sum_ref[...] = jnp.zeros_like(sum_ref)
        ssq_ref[...] = jnp.zeros_like(ssq_ref)

    x = x_ref[...].astype(jnp.float32)
    sum_ref[...] += jnp.sum(x, axis=-1, keepdims=True)
    ssq_ref[...] += jnp.sum(x * x, axis=-1, keepdims=True)


# ------------------------------ tiling helpers ------------------------------

_TILE_ROWS = 256    # sublane-aligned row-tile target (multiple of 8)
_TILE_COLS = 2048   # lane-aligned col-tile target (512-2048 lanes ~ HBM roofline)


def _choose_tile(dim, target, align):
    """Largest multiple of `align` that divides `dim` and is <= target;
    otherwise the full dim (always a legal block shape)."""
    if dim <= target:
        return dim
    t = (target // align) * align
    while t >= align:
        if dim % t == 0:
            return t
        t -= align
    return dim


# ------------------------------ JAX wrappers --------------------------------

def actnorm_forward(x, scale, bias):
    """_forward: y = (x + bias) * scale, per channel.  x is NCHW."""
    n, c, h, w = x.shape
    r, m = n * c, h * w
    x2 = x.reshape(r, m)  # free: NCHW is contiguous as (N*C, H*W)
    scale_r = jnp.tile(scale, n).reshape(r, 1).astype(x.dtype)  # row r -> channel r % C
    bias_r = jnp.tile(bias, n).reshape(r, 1).astype(x.dtype)

    tr = _choose_tile(r, _TILE_ROWS, 8)
    tm = _choose_tile(m, _TILE_COLS, 128)
    grid = (r // tr, m // tm)

    y2 = pl.pallas_call(
        _affine_kernel,
        out_shape=jax.ShapeDtypeStruct((r, m), x.dtype),
        grid_spec=pltpu.PrefetchScalarGridSpec(
            num_scalar_prefetch=0,
            grid=grid,
            in_specs=[
                pl.BlockSpec((tr, tm), lambda i, j: (i, j)),
                pl.BlockSpec((tr, 1), lambda i, j: (i, 0)),
                pl.BlockSpec((tr, 1), lambda i, j: (i, 0)),
            ],
            out_specs=pl.BlockSpec((tr, tm), lambda i, j: (i, j)),
        ),
        compiler_params=pltpu.CompilerParams(
            dimension_semantics=("parallel", "parallel")),
    )(x2, scale_r, bias_r)
    return y2.reshape(n, c, h, w)


def actnorm_init(x, eps=1e-6):
    """_init: data-dependent init.  Returns (y, new_scale, new_bias).  x is NCHW."""
    n, c, h, w = x.shape
    r, m = n * c, h * w
    x2 = x.reshape(r, m)  # free reshape, no HBM transpose

    tr = _choose_tile(r, _TILE_ROWS, 8)
    tm = _choose_tile(m, _TILE_COLS, 128)
    grid = (r // tr, m // tm)  # reduction (column) axis last

    row_sum, row_ssq = pl.pallas_call(
        _reduce_kernel,
        out_shape=(
            jax.ShapeDtypeStruct((r, 1), jnp.float32),
            jax.ShapeDtypeStruct((r, 1), jnp.float32),
        ),
        grid_spec=pltpu.PrefetchScalarGridSpec(
            num_scalar_prefetch=0,
            grid=grid,
            in_specs=[pl.BlockSpec((tr, tm), lambda i, j: (i, j))],
            out_specs=[
                pl.BlockSpec((tr, 1), lambda i, j: (i, 0)),
                pl.BlockSpec((tr, 1), lambda i, j: (i, 0)),
            ],
        ),
        compiler_params=pltpu.CompilerParams(
            dimension_semantics=("parallel", "arbitrary")),
    )(x2)

    # Fold the N per-row partials into per-channel stats (tiny, outside kernel).
    count = jnp.float32(n * m)
    ch_sum = row_sum.reshape(n, c).sum(axis=0)
    ch_ssq = row_ssq.reshape(n, c).sum(axis=0)
    mean = ch_sum / count
    var = ch_ssq / count - mean * mean            # biased (1/m) estimator
    new_scale = jax.lax.rsqrt(var + eps).astype(x.dtype)
    new_bias = (-mean).astype(x.dtype)

    # Second pass re-reads x to apply the freshly initialized affine.
    y = actnorm_forward(x, new_scale, new_bias)
    return y, new_scale, new_bias


# ------------------------------- module layer --------------------------------

class DataDepInitModule:
    """JAX/Pallas mirror of compression.nn.DataDepInitModule (dispatch only)."""

    def _init(self, *args, **kwargs):
        raise NotImplementedError

    def _forward(self, *args, **kwargs):
        raise NotImplementedError

    def forward(self, *args, **kwargs):
        if _INIT_ENABLED:
            # torch.no_grad() equivalent: stop gradients through the init pass.
            return jax.tree_util.tree_map(
                jax.lax.stop_gradient, self._init(*args, **kwargs)
            )
        return self._forward(*args, **kwargs)

    __call__ = forward


class ActNormDD(DataDepInitModule):
    """Concrete data-dep-init module: per-channel affine (ActNorm-style)."""

    def __init__(self, num_channels, dtype=jnp.float32):
        self.scale = jnp.ones((num_channels,), dtype)
        self.bias = jnp.zeros((num_channels,), dtype)

    def _init(self, x):
        # TODO(synk): Python-side parameter mutation is eager-only; under
        # jax.jit the updated scale/bias must be returned/threaded explicitly.
        y, new_scale, new_bias = actnorm_init(x)
        self.scale = new_scale
        self.bias = new_bias
        return y

    def _forward(self, x):
        return actnorm_forward(x, self.scale, self.bias)


# ---------------------------------- main ------------------------------------

if __name__ == "__main__":
    key = jax.random.PRNGKey(0)
    N, C, H, W = 2, 4, 16, 16
    x = jax.random.normal(key, (N, C, H, W), dtype=jnp.float32) * 3.0 + 1.5

    mod = ActNormDD(C)

    # Data-dependent init pass (forward() with _INIT_ENABLED=True).
    _INIT_ENABLED = True
    y_init = mod(x)
    _INIT_ENABLED = False

    # Standard forward pass.
    y_fwd = mod(x)
    jax.block_until_ready(y_fwd)

    # Reference check against plain JAX.
    mean_ref = jnp.mean(x, axis=(0, 2, 3))
    var_ref = jnp.mean((x - mean_ref[None, :, None, None]) ** 2, axis=(0, 2, 3))
    scale_ref = jax.lax.rsqrt(var_ref + 1e-6)
    y_ref = (x - mean_ref[None, :, None, None]) * scale_ref[None, :, None, None]

    assert jnp.allclose(y_init, y_ref, atol=1e-4), "init pass mismatch"
    assert jnp.allclose(y_fwd, y_ref, atol=1e-4), "forward pass mismatch"
    assert jnp.allclose(mod.scale, scale_ref, atol=1e-4)
    assert jnp.allclose(mod.bias, -mean_ref, atol=1e-4)

    print("KERNEL_OK")
</pallas_src>

<mosaic_0001>
module attributes {stable_mosaic.version = 11 : i64} {
  func.func @_reduce_kernel(%arg0: i32, %arg1: i32, %arg2: memref<8x256xf32, #tpu.memory_space<vmem>>, %arg3: memref<8x1xf32, #tpu.memory_space<vmem>>, %arg4: memref<8x1xf32, #tpu.memory_space<vmem>>) attributes {dimension_semantics = [#tpu.dimension_semantics<parallel>, #tpu.dimension_semantics<arbitrary>], iteration_bounds = array<i64: 1, 1>, scalar_prefetch = 0 : i64, scratch_operands = 0 : i64, tpu.core_type = #tpu.core_type<tc>, window_params = [{transform_indices = @transform_0, window_bounds = array<i64: 8, 256>}, {transform_indices = @transform_1, window_bounds = array<i64: 8, 1>}, {transform_indices = @transform_2, window_bounds = array<i64: 8, 1>}]} {
    %c0_i32 = arith.constant 0 : i32
    %0 = arith.cmpi eq, %arg1, %c0_i32 : i32
    %1 = arith.extui %0 : i1 to i32
    %c0_i32_0 = arith.constant 0 : i32
    %2 = arith.cmpi ne, %1, %c0_i32_0 : i32
    scf.if %2 {
      %cst_11 = arith.constant 0.000000e+00 : f32
      %15 = vector.broadcast %cst_11 : f32 to vector<8x1xf32>
      %c0_12 = arith.constant 0 : index
      %c0_13 = arith.constant 0 : index
      %16 = vector.load %arg3[%c0_12, %c0_13] : memref<8x1xf32, #tpu.memory_space<vmem>>, vector<8x1xf32>
      tpu.vector_store %arg3[%c0_12, %c0_13], %15 {strides = array<i32>} : memref<8x1xf32, #tpu.memory_space<vmem>>, vector<8x1xf32>,
      %cst_14 = arith.constant 0.000000e+00 : f32
      %17 = vector.broadcast %cst_14 : f32 to vector<8x1xf32>
      %c0_15 = arith.constant 0 : index
      %c0_16 = arith.constant 0 : index
      %18 = vector.load %arg4[%c0_15, %c0_16] : memref<8x1xf32, #tpu.memory_space<vmem>>, vector<8x1xf32>
      tpu.vector_store %arg4[%c0_15, %c0_16], %17 {strides = array<i32>} : memref<8x1xf32, #tpu.memory_space<vmem>>, vector<8x1xf32>,
    } else {
    }
    %c0 = arith.constant 0 : index
    %c0_1 = arith.constant 0 : index
    %3 = vector.load %arg2[%c0, %c0_1] : memref<8x256xf32, #tpu.memory_space<vmem>>, vector<8x256xf32>
    %c0_2 = arith.constant 0 : index
    %c0_3 = arith.constant 0 : index
    %4 = vector.load %arg3[%c0_2, %c0_3] : memref<8x1xf32, #tpu.memory_space<vmem>>, vector<8x1xf32>
    %cst = arith.constant dense<0.000000e+00> : vector<8xf32>
    %5 = vector.multi_reduction <add>, %3, %cst [1] : vector<8x256xf32> to vector<8xf32>
    %6 = vector.shape_cast %5 : vector<8xf32> to vector<8x1xf32>
    %7 = arith.addf %4, %6 : vector<8x1xf32>
    %c0_4 = arith.constant 0 : index
    %c0_5 = arith.constant 0 : index
    %8 = vector.load %arg3[%c0_4, %c0_5] : memref<8x1xf32, #tpu.memory_space<vmem>>, vector<8x1xf32>
    tpu.vector_store %arg3[%c0_4, %c0_5], %7 {strides = array<i32>} : memref<8x1xf32, #tpu.memory_space<vmem>>, vector<8x1xf32>,
    %c0_6 = arith.constant 0 : index
    %c0_7 = arith.constant 0 : index
    %9 = vector.load %arg4[%c0_6, %c0_7] : memref<8x1xf32, #tpu.memory_space<vmem>>, vector<8x1xf32>
    %10 = arith.mulf %3, %3 : vector<8x256xf32>
    %cst_8 = arith.constant dense<0.000000e+00> : vector<8xf32>
    %11 = vector.multi_reduction <add>, %10, %cst_8 [1] : vector<8x256xf32> to vector<8xf32>
    %12 = vector.shape_cast %11 : vector<8xf32> to vector<8x1xf32>
    %13 = arith.addf %9, %12 : vector<8x1xf32>
    %c0_9 = arith.constant 0 : index
    %c0_10 = arith.constant 0 : index
    %14 = vector.load %arg4[%c0_9, %c0_10] : memref<8x1xf32, #tpu.memory_space<vmem>>, vector<8x1xf32>
    tpu.vector_store %arg4[%c0_9, %c0_10], %13 {strides = array<i32>} : memref<8x1xf32, #tpu.memory_space<vmem>>, vector<8x1xf32>,
    return
  }
  func.func @transform_0(%arg0: i32, %arg1: i32) -> (i32, i32) {
    %c0_i32 = arith.constant 0 : i32
    return %arg0, %arg1 : i32, i32
  }
  func.func @transform_1(%arg0: i32, %arg1: i32) -> (i32, i32) {
    %c0_i32 = arith.constant 0 : i32
    %c0_i32_0 = arith.constant 0 : i32
    return %arg0, %c0_i32 : i32, i32
  }
  func.func @transform_2(%arg0: i32, %arg1: i32) -> (i32, i32) {
    %c0_i32 = arith.constant 0 : i32
    %c0_i32_0 = arith.constant 0 : i32
    return %arg0, %c0_i32 : i32, i32
  }
}

</mosaic_0001>

<bundles_post_ra>
// kernel: tpu_custom_call.1
= control target key start
LH: loop header
LB: loop body
LE: loop exit
PB: predicated region body
PF: predicated region fallthrough
CT: control target
= control target key end

     0   :  { %8 = vsyncpa [#allocation3], 0  ;;  %s79_s9 = smov [#allocation2]   ;;  %s121_s0 = inlined_call_operand.hbm [shape: f32[8,256], index: 0, kind: input, shape index: {}]   ;;  %s122_s1 = inlined_call_operand.vmem [shape: f32[8,1], index: 1, kind: output, shape index: {0}]   ;;  %s123_s2 = inlined_call_operand.vmem [shape: f32[8,1], index: 2, kind: output, shape index: {1}]  }
   0x1   :  { %s15_s10 = sshll.u32 %s79_s9, 4  ;;  %s16_s10 = int_to_ptr.vmem [resolvable:$true] %s15_s10 }
   0x2   :  { %s65_s11 = scalar_lea.vmem %s16_s10, 256  ;;  %p70_p1 = scmp.lt.s32.totalorder %s16_s10, %s16_s10 }
   0x3   :  { %p66_p0 = scmp.ne.s32.totalorder %s16_s10, %s65_s11  ;;  %p71_p2 = scmp.lt.s32.totalorder %s65_s11, %s65_s11 }
   0x5   :  { %p72_p3 = por %p71_p2, %p70_p1 }
   0x7   :  { %p73_p4 = pnand %p72_p3, %p66_p0 }
   0x9   :  { %76 = shalt.err (!%p73_p4)
}
   0xa   :  { %18 = dma.hbm_to_vmem [thread:$0]  %s121_s0, 256, %s16_s10, [#allocation3]  }
   0xb   :  { %77 = dma.done.wait [#allocation3], 256  }
   0xc   :  { %78 = vsyncadd [#allocation3], 4294967040  ;;  %vm26_vm0 = vcmask 7168   ;;  %v80_v0 = vmov 0.0   ;;  %v29_v1 = vld [vmem:[#allocation2] sm:$0xff]  ;;  %v30_v2 = vld [vmem:[#allocation2 + $0x8] sm:$0xff] }
   0xd   :  { %27 = vst.msk [vmem:[%s122_s1] sm:$0xff] %vm26_vm0, %v80_v0  ;;  %28 = vst.msk [vmem:[%s123_s2] sm:$0xff] %vm26_vm0, %v80_v0  ;;  %v32_v3 = vadd.f32 %v30_v2, %v29_v1  ;;  %v39_v4 = vmul.f32 %v29_v1, %v29_v1  ;;  %v40_v5 = vmul.f32 %v30_v2, %v30_v2 }
   0xf   :  { %33 = vadd.xlane.f32.xlu0 %v32_v3  ;;  %v41_v6 = vadd.f32 %v40_v5, %v39_v4 }
  0x13   :  { %42 = vadd.xlane.f32.xlu0 %v41_v6 }
  0x14   :  { %v31_v7 = vld [vmem:[%s122_s1] sm:$0xff] }
  0x15   :  { %v38_v10 = vld [vmem:[%s123_s2] sm:$0xff] }
  0x98   :  { %v34_v8 = vpop.xlane.xlu0 %33 }
  0x99   :  { %v35_v9 = vadd.f32 %v34_v8, %v31_v7 }
  0x9b   :  { %37 = vst.msk [vmem:[%s122_s1] sm:$0xff] %vm26_vm0, %v35_v9 }
  0x9c   :  { %v43_v11 = vpop.xlane.xlu0 %42 }
  0x9d   :  { %v44_v12 = vadd.f32 %v43_v11, %v38_v10 }
  0x9f   :  { %45 = vst.msk [vmem:[%s123_s2] sm:$0xff] %vm26_vm0, %v44_v12 }
  0xa0   :  { %54 = vsyncpa [#allocation3], 1 }

</bundles_post_ra>
